<compile_context>
chip_gen: v5e
topology: v5e:2x2
jax: 0.10.0
libtpu: 0.0.40
codegen_flags: <defaults>
</compile_context>

<pallas_src>
import functools

import jax
import jax.numpy as jnp
from jax import lax
from jax.experimental import pallas as pl
from jax.experimental.pallas import tpu as pltpu


def _mlp_kernel(x_ref, w1_ref, b1_ref, w2_ref, b2_ref, w3_ref, b3_ref, o_ref,
                *, tc, n_chunks):
    # Tiny resident weights/biases, hoisted once per grid step.
    w1 = w1_ref[...]            # (dim2, dim1) bf16
    w2 = w2_ref[...]            # (dim3, dim2) bf16
    b1 = b1_ref[...]            # (dim2, 1)  f32 column (broadcast over lanes)
    b2 = b2_ref[...]            # (dim3, 1)  f32
    w3 = w3_ref[...]            # (dim3, 1)  f32
    b3 = b3_ref[...]            # (1, 1)     f32

    # Static, fully-unrolled chunk loop over tc-row slices of the block: all
    # slice offsets are compile-time constants (aligned loads / unmasked stores)
    # and each chunk's live set ends at its o_ref store.
    for c in range(n_chunks):
        off = c * tc
        # In-kernel bf16 cast (no HBM pre-pass over x).
        xc = x_ref[off:off + tc, :].astype(jnp.bfloat16)            # (tc, dim1)

        # Layer 1 on the MXU, contracting the last dims of both operands so the
        # result keeps the row tile on lanes: (dim2, dim1) x (tc, dim1) -> (dim2, tc).
        h1 = lax.dot_general(w1, xc, (((1,), (1,)), ((), ())),
                             preferred_element_type=jnp.float32)
        h1 = jnp.maximum(h1 + b1, 0.0)                              # f32, VPU

        # Layer 2 on the MXU (bf16 operands, f32 accumulation).
        h2 = jnp.dot(w2, h1.astype(jnp.bfloat16),
                     preferred_element_type=jnp.float32)            # (dim3, tc)
        h2 = jnp.maximum(h2 + b2, 0.0)

        # Layer 3 (dim3 -> 1): width-1 matmul would waste the MXU; do it as a
        # VPU multiply + XLU sublane reduce -> lane-dense (1, tc) slab.
        y = jnp.sum(h2 * w3, axis=0, keepdims=True) + b3            # (1, tc)
        o_ref[:, off:off + tc] = jnp.maximum(y, 0.0).astype(o_ref.dtype)


@functools.partial(jax.jit, static_argnames=("tm",))
def mlses_forward(x, w1, b1, w2, b2, w3, b3, *, tm=1024):
    """x: [N, dim1] f32; w_i: PyTorch layout [out, in]; b_i: [out]. Returns [N, 1]."""
    assert tm >= 256 and (tm & (tm - 1)) == 0, "tm must be a power of two >= 256"
    N, dim1 = x.shape
    dim2 = w1.shape[0]
    dim3 = w2.shape[0]

    # Keep at least 2 grid steps when N allows so both v7x TensorCores get work
    # (no-op on single-TC v5e/v6e); never drop below 256 rows per block.
    tm_eff = tm
    while tm_eff > 256 and pl.cdiv(N, tm_eff) < 2:
        tm_eff //= 2
    tc = 256                      # in-kernel chunk width (vreg-pressure control)
    n_chunks = tm_eff // tc

    grid_m = pl.cdiv(N, tm_eff)
    n_out = grid_m * tm_eff       # output padded to whole lane-dense blocks

    # Only the tiny weights get wrapper-side cast/reshape; x goes straight in.
    w1b = w1.astype(jnp.bfloat16)                         # (dim2, dim1)
    w2b = w2.astype(jnp.bfloat16)                         # (dim3, dim2)
    b1c = b1.reshape(dim2, 1).astype(jnp.float32)
    b2c = b2.reshape(dim3, 1).astype(jnp.float32)
    w3c = w3.reshape(1, dim3).T.astype(jnp.float32)       # (dim3, 1)
    b3c = b3.reshape(1, 1).astype(jnp.float32)

    flops = 2 * n_out * (dim1 * dim2 + dim2 * dim3 + dim3)
    bytes_accessed = (
        x.size * x.dtype.itemsize                         # f32 activation stream
        + (w1b.size + w2b.size) * 2                       # bf16 weights
        + (b1c.size + b2c.size + w3c.size + b3c.size) * 4
        + n_out * 4                                       # f32 output
    )

    kernel = functools.partial(_mlp_kernel, tc=tc, n_chunks=n_chunks)

    # TODO(synk): resident W/b BlockSpecs could use pipeline_mode=pl.Buffered(1)
    # to drop the dead second pipeline buffer (few-KiB VMEM, low-single-digit %).
    out = pl.pallas_call(
        kernel,
        out_shape=jax.ShapeDtypeStruct((1, n_out), jnp.float32),
        grid_spec=pltpu.PrefetchScalarGridSpec(
            num_scalar_prefetch=0,
            grid=(grid_m,),
            in_specs=[
                pl.BlockSpec((tm_eff, dim1), lambda i: (i, 0)),   # x row tile (contiguous DMA)
                pl.BlockSpec((dim2, dim1), lambda i: (0, 0)),     # W1 (resident)
                pl.BlockSpec((dim2, 1), lambda i: (0, 0)),        # b1
                pl.BlockSpec((dim3, dim2), lambda i: (0, 0)),     # W2 (resident)
                pl.BlockSpec((dim3, 1), lambda i: (0, 0)),        # b2
                pl.BlockSpec((dim3, 1), lambda i: (0, 0)),        # w3 column
                pl.BlockSpec((1, 1), lambda i: (0, 0)),           # b3
            ],
            out_specs=pl.BlockSpec((1, tm_eff), lambda i: (0, i)),  # lane-dense slab
        ),
        compiler_params=pltpu.CompilerParams(
            dimension_semantics=("parallel",),
        ),
        cost_estimate=pl.CostEstimate(
            flops=flops, transcendentals=0, bytes_accessed=bytes_accessed),
    )(x, w1b, b1c, w2b, b2c, w3c, b3c)

    # Lanes >= N (from the padded last input block) are dropped here.
    return out[0, :N].reshape(N, 1).astype(x.dtype)


def init_params(key, dim1, dim2, dim3, dtype=jnp.float32):
    """Deterministic init mirroring nn.Linear: U(-1/sqrt(fan_in), 1/sqrt(fan_in)),
    PyTorch layout (W: [out, in], b: [out])."""
    ks = jax.random.split(key, 6)

    def linear(kw, kb, fan_in, fan_out):
        bound = 1.0 / jnp.sqrt(jnp.array(fan_in, dtype=jnp.float32))
        w = jax.random.uniform(kw, (fan_out, fan_in), dtype, -bound, bound)
        b = jax.random.uniform(kb, (fan_out,), dtype, -bound, bound)
        return w, b

    w1, b1 = linear(ks[0], ks[1], dim1, dim2)
    w2, b2 = linear(ks[2], ks[3], dim2, dim3)
    w3, b3 = linear(ks[4], ks[5], dim3, 1)
    return w1, b1, w2, b2, w3, b3


def reference_forward_f32(x, w1, b1, w2, b2, w3, b3):
    h = jnp.maximum(x @ w1.T + b1, 0.0)
    h = jnp.maximum(h @ w2.T + b2, 0.0)
    h = jnp.maximum(h @ w3.T + b3, 0.0)
    return h


def reference_forward_bf16(x, w1, b1, w2, b2, w3, b3):
    # Same math path as the kernel: bf16 MXU operands, f32 accumulation,
    # f32 bias/ReLU, f32 final layer.
    h = jnp.dot(x.astype(jnp.bfloat16), w1.T.astype(jnp.bfloat16),
                preferred_element_type=jnp.float32)
    h = jnp.maximum(h + b1, 0.0)
    h = jnp.dot(h.astype(jnp.bfloat16), w2.T.astype(jnp.bfloat16),
                preferred_element_type=jnp.float32)
    h = jnp.maximum(h + b2, 0.0)
    h = jnp.maximum(h @ w3.T + b3, 0.0)
    return h


if __name__ == "__main__":
    dim1, dim2, dim3 = 32, 64, 32
    N = 1000          # not a multiple of tm: exercises partial last input block
                      # and the v7x grid>=2 clamp (tm 1024 -> 512, grid = 2)

    key = jax.random.PRNGKey(0)
    kx, kp = jax.random.split(key)
    x = jax.random.normal(kx, (N, dim1), dtype=jnp.float32)
    params = init_params(kp, dim1, dim2, dim3)

    out = mlses_forward(x, *params)
    out = jax.block_until_ready(out)
    assert out.shape == (N, 1), out.shape

    # Tight check against a reference using the same bf16-operand math.
    ref_bf16 = reference_forward_bf16(x, *params)
    assert jnp.allclose(out, ref_bf16, atol=2e-3, rtol=2e-3), float(
        jnp.max(jnp.abs(out - ref_bf16)))

    # Looser semantic check against the pure-f32 PyTorch-equivalent forward.
    ref_f32 = reference_forward_f32(x, *params)
    assert jnp.allclose(out, ref_f32, atol=1e-1, rtol=1e-1), float(
        jnp.max(jnp.abs(out - ref_f32)))

    print("KERNEL_OK")
</pallas_src>

<mosaic_0001>
module attributes {stable_mosaic.version = 11 : i64} {
  func.func @_mlp_kernel(%arg0: i32, %arg1: memref<512x32xf32, #tpu.memory_space<vmem>>, %arg2: memref<64x32xbf16, #tpu.memory_space<vmem>>, %arg3: memref<64x1xf32, #tpu.memory_space<vmem>>, %arg4: memref<32x64xbf16, #tpu.memory_space<vmem>>, %arg5: memref<32x1xf32, #tpu.memory_space<vmem>>, %arg6: memref<32x1xf32, #tpu.memory_space<vmem>>, %arg7: memref<1x1xf32, #tpu.memory_space<vmem>>, %arg8: memref<1x512xf32, #tpu.memory_space<vmem>>) attributes {dimension_semantics = [#tpu.dimension_semantics<parallel>], iteration_bounds = array<i64: 2>, scalar_prefetch = 0 : i64, scratch_operands = 0 : i64, tpu.core_type = #tpu.core_type<tc>, window_params = [{transform_indices = @transform_0, window_bounds = array<i64: 512, 32>}, {pipeline_mode = #tpu.pipeline_mode<synchronous>, transform_indices = @transform_1, window_bounds = array<i64: 64, 32>}, {pipeline_mode = #tpu.pipeline_mode<synchronous>, transform_indices = @transform_2, window_bounds = array<i64: 64, 1>}, {pipeline_mode = #tpu.pipeline_mode<synchronous>, transform_indices = @transform_3, window_bounds = array<i64: 32, 64>}, {pipeline_mode = #tpu.pipeline_mode<synchronous>, transform_indices = @transform_4, window_bounds = array<i64: 32, 1>}, {pipeline_mode = #tpu.pipeline_mode<synchronous>, transform_indices = @transform_5, window_bounds = array<i64: 32, 1>}, {pipeline_mode = #tpu.pipeline_mode<synchronous>, transform_indices = @transform_6, window_bounds = array<i64: 1, 1>}, {transform_indices = @transform_7, window_bounds = array<i64: 1, 512>}]} {
    %c0 = arith.constant 0 : index
    %c0_0 = arith.constant 0 : index
    %0 = vector.load %arg2[%c0, %c0_0] : memref<64x32xbf16, #tpu.memory_space<vmem>>, vector<64x32xbf16>
    %c0_1 = arith.constant 0 : index
    %c0_2 = arith.constant 0 : index
    %1 = vector.load %arg4[%c0_1, %c0_2] : memref<32x64xbf16, #tpu.memory_space<vmem>>, vector<32x64xbf16>
    %c0_3 = arith.constant 0 : index
    %c0_4 = arith.constant 0 : index
    %2 = vector.load %arg3[%c0_3, %c0_4] : memref<64x1xf32, #tpu.memory_space<vmem>>, vector<64x1xf32>
    %c0_5 = arith.constant 0 : index
    %c0_6 = arith.constant 0 : index
    %3 = vector.load %arg5[%c0_5, %c0_6] : memref<32x1xf32, #tpu.memory_space<vmem>>, vector<32x1xf32>
    %c0_7 = arith.constant 0 : index
    %c0_8 = arith.constant 0 : index
    %4 = vector.load %arg6[%c0_7, %c0_8] : memref<32x1xf32, #tpu.memory_space<vmem>>, vector<32x1xf32>
    %c0_9 = arith.constant 0 : index
    %c0_10 = arith.constant 0 : index
    %5 = vector.load %arg7[%c0_9, %c0_10] : memref<1x1xf32, #tpu.memory_space<vmem>>, vector<1x1xf32>
    %c0_11 = arith.constant 0 : index
    %c0_12 = arith.constant 0 : index
    %6 = vector.load %arg1[%c0_11, %c0_12] : memref<512x32xf32, #tpu.memory_space<vmem>>, vector<256x32xf32>
    %7 = arith.truncf %6 : vector<256x32xf32> to vector<256x32xbf16>
    %cst = arith.constant dense<0.000000e+00> : vector<64x256xf32>
    %8 = tpu.matmul %0, %7, %cst {dimension_numbers = #tpu.dot_dimension_numbers<[1], [1], [0], [0], [0, 0, 1, 0], [], []>} : vector<64x32xbf16>, vector<256x32xbf16>, vector<64x256xf32> -> vector<64x256xf32>
    %9 = vector.broadcast %2 : vector<64x1xf32> to vector<64x256xf32>
    %10 = arith.addf %8, %9 : vector<64x256xf32>
    %cst_13 = arith.constant 0.000000e+00 : f32
    %11 = vector.broadcast %cst_13 : f32 to vector<64x256xf32>
    %12 = arith.maximumf %10, %11 : vector<64x256xf32>
    %13 = arith.truncf %12 : vector<64x256xf32> to vector<64x256xbf16>
    %cst_14 = arith.constant dense<0.000000e+00> : vector<32x256xf32>
    %14 = tpu.matmul %1, %13, %cst_14 {dimension_numbers = #tpu.dot_dimension_numbers<[1], [0], [0], [1], [0, 0, 1, 1], [], []>} : vector<32x64xbf16>, vector<64x256xbf16>, vector<32x256xf32> -> vector<32x256xf32>
    %15 = vector.broadcast %3 : vector<32x1xf32> to vector<32x256xf32>
    %16 = arith.addf %14, %15 : vector<32x256xf32>
    %cst_15 = arith.constant 0.000000e+00 : f32
    %17 = vector.broadcast %cst_15 : f32 to vector<32x256xf32>
    %18 = arith.maximumf %16, %17 : vector<32x256xf32>
    %19 = vector.broadcast %4 : vector<32x1xf32> to vector<32x256xf32>
    %20 = arith.mulf %18, %19 : vector<32x256xf32>
    %cst_16 = arith.constant dense<0.000000e+00> : vector<256xf32>
    %21 = vector.multi_reduction <add>, %20, %cst_16 [0] : vector<32x256xf32> to vector<256xf32>
    %22 = vector.shape_cast %21 : vector<256xf32> to vector<1x256xf32>
    %23 = vector.broadcast %5 : vector<1x1xf32> to vector<1x256xf32>
    %24 = arith.addf %22, %23 : vector<1x256xf32>
    %cst_17 = arith.constant 0.000000e+00 : f32
    %25 = vector.broadcast %cst_17 : f32 to vector<1x256xf32>
    %26 = arith.maximumf %24, %25 : vector<1x256xf32>
    %c0_18 = arith.constant 0 : index
    %c0_19 = arith.constant 0 : index
    %27 = vector.load %arg8[%c0_18, %c0_19] : memref<1x512xf32, #tpu.memory_space<vmem>>, vector<1x256xf32>
    tpu.vector_store %arg8[%c0_18, %c0_19], %26 {strides = array<i32>} : memref<1x512xf32, #tpu.memory_space<vmem>>, vector<1x256xf32>,
    %c256 = arith.constant 256 : index
    %c0_20 = arith.constant 0 : index
    %28 = vector.load %arg1[%c256, %c0_20] : memref<512x32xf32, #tpu.memory_space<vmem>>, vector<256x32xf32>
    %29 = arith.truncf %28 : vector<256x32xf32> to vector<256x32xbf16>
    %cst_21 = arith.constant dense<0.000000e+00> : vector<64x256xf32>
    %30 = tpu.matmul %0, %29, %cst_21 {dimension_numbers = #tpu.dot_dimension_numbers<[1], [1], [0], [0], [0, 0, 1, 0], [], []>} : vector<64x32xbf16>, vector<256x32xbf16>, vector<64x256xf32> -> vector<64x256xf32>
    %31 = vector.broadcast %2 : vector<64x1xf32> to vector<64x256xf32>
    %32 = arith.addf %30, %31 : vector<64x256xf32>
    %cst_22 = arith.constant 0.000000e+00 : f32
    %33 = vector.broadcast %cst_22 : f32 to vector<64x256xf32>
    %34 = arith.maximumf %32, %33 : vector<64x256xf32>
    %35 = arith.truncf %34 : vector<64x256xf32> to vector<64x256xbf16>
    %cst_23 = arith.constant dense<0.000000e+00> : vector<32x256xf32>
    %36 = tpu.matmul %1, %35, %cst_23 {dimension_numbers = #tpu.dot_dimension_numbers<[1], [0], [0], [1], [0, 0, 1, 1], [], []>} : vector<32x64xbf16>, vector<64x256xbf16>, vector<32x256xf32> -> vector<32x256xf32>
    %37 = vector.broadcast %3 : vector<32x1xf32> to vector<32x256xf32>
    %38 = arith.addf %36, %37 : vector<32x256xf32>
    %cst_24 = arith.constant 0.000000e+00 : f32
    %39 = vector.broadcast %cst_24 : f32 to vector<32x256xf32>
    %40 = arith.maximumf %38, %39 : vector<32x256xf32>
    %41 = vector.broadcast %4 : vector<32x1xf32> to vector<32x256xf32>
    %42 = arith.mulf %40, %41 : vector<32x256xf32>
    %cst_25 = arith.constant dense<0.000000e+00> : vector<256xf32>
    %43 = vector.multi_reduction <add>, %42, %cst_25 [0] : vector<32x256xf32> to vector<256xf32>
    %44 = vector.shape_cast %43 : vector<256xf32> to vector<1x256xf32>
    %45 = vector.broadcast %5 : vector<1x1xf32> to vector<1x256xf32>
    %46 = arith.addf %44, %45 : vector<1x256xf32>
    %cst_26 = arith.constant 0.000000e+00 : f32
    %47 = vector.broadcast %cst_26 : f32 to vector<1x256xf32>
    %48 = arith.maximumf %46, %47 : vector<1x256xf32>
    %c0_27 = arith.constant 0 : index
    %c256_28 = arith.constant 256 : index
    %49 = vector.load %arg8[%c0_27, %c256_28] : memref<1x512xf32, #tpu.memory_space<vmem>>, vector<1x256xf32>
    tpu.vector_store %arg8[%c0_27, %c256_28], %48 {strides = array<i32>} : memref<1x512xf32, #tpu.memory_space<vmem>>, vector<1x256xf32>,
    return
  }
  func.func @transform_0(%arg0: i32) -> (i32, i32) {
    %c0_i32 = arith.constant 0 : i32
    %c0_i32_0 = arith.constant 0 : i32
    return %arg0, %c0_i32 : i32, i32
  }
  func.func @transform_1(%arg0: i32) -> (i32, i32) {
    %c0_i32 = arith.constant 0 : i32
    %c0_i32_0 = arith.constant 0 : i32
    %c0_i32_1 = arith.constant 0 : i32
    return %c0_i32, %c0_i32_0 : i32, i32
  }
  func.func @transform_2(%arg0: i32) -> (i32, i32) {
    %c0_i32 = arith.constant 0 : i32
    %c0_i32_0 = arith.constant 0 : i32
    %c0_i32_1 = arith.constant 0 : i32
    return %c0_i32, %c0_i32_0 : i32, i32
  }
  func.func @transform_3(%arg0: i32) -> (i32, i32) {
    %c0_i32 = arith.constant 0 : i32
    %c0_i32_0 = arith.constant 0 : i32
    %c0_i32_1 = arith.constant 0 : i32
    return %c0_i32, %c0_i32_0 : i32, i32
  }
  func.func @transform_4(%arg0: i32) -> (i32, i32) {
    %c0_i32 = arith.constant 0 : i32
    %c0_i32_0 = arith.constant 0 : i32
    %c0_i32_1 = arith.constant 0 : i32
    return %c0_i32, %c0_i32_0 : i32, i32
  }
  func.func @transform_5(%arg0: i32) -> (i32, i32) {
    %c0_i32 = arith.constant 0 : i32
    %c0_i32_0 = arith.constant 0 : i32
    %c0_i32_1 = arith.constant 0 : i32
    return %c0_i32, %c0_i32_0 : i32, i32
  }
  func.func @transform_6(%arg0: i32) -> (i32, i32) {
    %c0_i32 = arith.constant 0 : i32
    %c0_i32_0 = arith.constant 0 : i32
    %c0_i32_1 = arith.constant 0 : i32
    return %c0_i32, %c0_i32_0 : i32, i32
  }
  func.func @transform_7(%arg0: i32) -> (i32, i32) {
    %c0_i32 = arith.constant 0 : i32
    %c0_i32_0 = arith.constant 0 : i32
    return %c0_i32, %arg0 : i32, i32
  }
}

</mosaic_0001>

<bundles_post_ra>
// kernel: mlses_forward.1
= control target key start
LH: loop header
LB: loop body
LE: loop exit
PB: predicated region body
PF: predicated region fallthrough
CT: control target
= control target key end

     0   :  { %s1171_s26 = smov 0   ;;  %s1532_s0 = inlined_call_operand.vmem [shape: f32[1000,32], index: 0, kind: input, shape index: {}]   ;;  %s1533_s1 = inlined_call_operand.vmem [shape: bf16[64,32], index: 1, kind: input, shape index: {}]   ;;  %s1534_s2 = inlined_call_operand.vmem [shape: f32[64,1], index: 2, kind: input, shape index: {}]   ;;  %s1535_s3 = inlined_call_operand.vmem [shape: bf16[32,64], index: 3, kind: input, shape index: {}]   ;;  %s1536_s4 = inlined_call_operand.vmem [shape: f32[32,1], index: 4, kind: input, shape index: {}]   ;;  %s1537_s5 = inlined_call_operand.vmem [shape: f32[32,1], index: 5, kind: input, shape index: {}]   ;;  %s1538_s6 = inlined_call_operand.<no memory space> [shape: f32[1,1], index: 6, kind: input, shape index: {}]   ;;  %s1539_s7 = inlined_call_operand.vmem [shape: f32[1,1024], index: 7, kind: output, shape index: {}]  }
   0x1   :  { %v12_v0 = vstv %s1538_s6 }
   0x2   :  { %13 = vst [vmem:[#allocation2] sm:$0x1] %v12_v0 }
   0x3 LB: > { %s1043_s27 = sadd.s32 4294967295, %s1125_s26   ;;  %p1047_p0 = scmp.ge.s32.totalorder %s1125_s26, 1  ;;  %s1125_s26 = sphi %s1171_s26, %s19_s26  }
   0x4   : > { %p248_p1 = scmp.lt.s32.totalorder %s1125_s26, 3 }
   0x6   : > { %p249_p2 = pnand %p1047_p0, %p248_p1 }
   0x7   : > { %s1048_s28 = sshll.u32 (!%p249_p2), %s1043_s27, 6 }
   0x8   : > { %252 = sbr.rel (%p249_p2) target bundleno = 738 (0x2e2), region = 48  ;;  %p288_p3 = scmp.lt.s32.totalorder (!%p249_p2), %s1048_s28, 124 }
   0xd   : > { %s1543_s28 = smov (!%p288_p3, %s1048_s28), 124  ;;  %vm440_vm0 = vcmask 261120   ;;  %v321_v38 = vld [vmem:[%s1534_s2 + $0x30] sm:$0xff]  ;;  %v1127_v40 = vmov 0   ;;  %v322_v47 = vld [vmem:[%s1534_s2 + $0x38] sm:$0xff]  ;;  %v319_v48 = vld [vmem:[%s1534_s2 + $0x20] sm:$0xff] }
   0xe   : > { %s1049_s6 = sshll.u32 %s1543_s28, 3  ;;  %1116 = vset.pattern.permute.xlu0 %v1127_v40  ;;  %1117 = vset.pattern.permute.xlu1 %v1127_v40  ;;  %v320_v55 = vld [vmem:[%s1534_s2 + $0x28] sm:$0xff]  ;;  %v315_v58 = vld [vmem:[%s1534_s2] sm:$0xff]  ;;  %vm613_vm1 = vcmask 523264   ;;  %vm725_vm2 = vcmask 1040384  }
   0xf   : > { %s1184_s8 = scalar_lea.vmem %s1532_s0, %s1049_s6  ;;  %412 = vperm.xlu0 %1116, %v321_v38   ;;  %1118 = vset.pattern.permute.xlu2 %v1127_v40 }
  0x10   : > { %v346_v1 = vld [vmem:[%s1184_s8 + $0x70] sm:$0xff]  ;;  %v347_v2 = vld [vmem:[%s1184_s8 + $0x78] sm:$0xff]  ;;  %v344_v7 = vld [vmem:[%s1184_s8 + $0x60] sm:$0xff]  ;;  %402 = vperm.xlu1 %1117, %v319_v48  }
  0x11   : > { %v362_v3 = vld [vmem:[%s1184_s8 + $0xf0] sm:$0xff]  ;;  %v371_v4 = vpack.c.bf16 %v347_v2, %v346_v1  ;;  %v363_v5 = vld [vmem:[%s1184_s8 + $0xf8] sm:$0xff]  ;;  %v345_v8 = vld [vmem:[%s1184_s8 + $0x68] sm:$0xff] }
  0x12   : > { %v379_v6 = vpack.c.bf16 %v363_v5, %v362_v3  ;;  %v360_v10 = vld [vmem:[%s1184_s8 + $0xe0] sm:$0xff]  ;;  %v361_v11 = vld [vmem:[%s1184_s8 + $0xe8] sm:$0xff]  ;;  %v370_v13 = vpack.c.bf16 %v345_v8, %v344_v7  ;;  %v342_v17 = vld [vmem:[%s1184_s8 + $0x50] sm:$0xff] }
  0x13   : > { %v475_v9 = vsel %vm440_vm0, %v371_v4, 0  ;;  %v378_v14 = vpack.c.bf16 %v361_v11, %v360_v10  ;;  %v343_v18 = vld [vmem:[%s1184_s8 + $0x58] sm:$0xff]  ;;  %v358_v19 = vld [vmem:[%s1184_s8 + $0xd0] sm:$0xff]  ;;  %v340_v25 = vld [vmem:[%s1184_s8 + $0x40] sm:$0xff] }
  0x14   : > { %501 = vmatpush.bf16.xpose.msra.mxu0 %v475_v9  ;;  %v499_v12 = vsel %vm440_vm0, %v379_v6, 0  ;;  %v472_v15 = vsel %vm440_vm0, %v370_v13, 0  ;;  %v359_v20 = vld [vmem:[%s1184_s8 + $0xd8] sm:$0xff]  ;;  %v369_v21 = vpack.c.bf16 %v343_v18, %v342_v17  ;;  %v341_v26 = vld [vmem:[%s1184_s8 + $0x48] sm:$0xff]  ;;  %v356_v27 = vld [vmem:[%s1184_s8 + $0xc0] sm:$0xff] }
  0x15   : > { %530 = vmatpush.bf16.xpose.msra.mxu1 %v499_v12  ;;  %v496_v16 = vsel %vm440_vm0, %v378_v14, 0  ;;  %v377_v22 = vpack.c.bf16 %v359_v20, %v358_v19  ;;  %v357_v28 = vld [vmem:[%s1184_s8 + $0xc8] sm:$0xff]  ;;  %v368_v29 = vpack.c.bf16 %v341_v26, %v340_v25  ;;  %v338_v33 = vld [vmem:[%s1184_s8 + $0x30] sm:$0xff]  ;;  %v339_v34 = vld [vmem:[%s1184_s8 + $0x38] sm:$0xff] }
  0x16   : > { %v469_v23 = vsel %vm440_vm0, %v369_v21, 0  ;;  %v376_v30 = vpack.c.bf16 %v357_v28, %v356_v27  ;;  %v354_v35 = vld [vmem:[%s1184_s8 + $0xb0] sm:$0xff]  ;;  %v355_v36 = vld [vmem:[%s1184_s8 + $0xb8] sm:$0xff]  ;;  %v367_v37 = vpack.c.bf16 %v339_v34, %v338_v33  ;;  %v336_v43 = vld [vmem:[%s1184_s8 + $0x20] sm:$0xff] }
  0x17   : > { %v493_v24 = vsel %vm440_vm0, %v377_v22, 0  ;;  %v466_v31 = vsel %vm440_vm0, %v368_v29, 0  ;;  %v375_v39 = vpack.c.bf16 %v355_v36, %v354_v35  ;;  %v337_v44 = vld [vmem:[%s1184_s8 + $0x28] sm:$0xff]  ;;  %v352_v45 = vld [vmem:[%s1184_s8 + $0xa0] sm:$0xff]  ;;  %417 = vperm.xlu0 %1116, %v322_v47   ;;  %v334_v53 = vld [vmem:[%s1184_s8 + $0x10] sm:$0xff] }
  0x18   : > { %v490_v32 = vsel %vm440_vm0, %v376_v30, 0  ;;  %v463_v41 = vsel %vm440_vm0, %v367_v37, 0  ;;  %v353_v46 = vld [vmem:[%s1184_s8 + $0xa8] sm:$0xff]  ;;  %v366_v49 = vpack.c.bf16 %v337_v44, %v336_v43  ;;  %v335_v54 = vld [vmem:[%s1184_s8 + $0x18] sm:$0xff]  ;;  %v350_v56 = vld [vmem:[%s1184_s8 + $0x90] sm:$0xff]  ;;  %407 = vperm.xlu1 %1117, %v320_v55  }
  0x19   : > { %v487_v42 = vsel %vm440_vm0, %v375_v39, 0  ;;  %v374_v50 = vpack.c.bf16 %v353_v46, %v352_v45  ;;  %v351_v57 = vld [vmem:[%s1184_s8 + $0x98] sm:$0xff]  ;;  %v365_v59 = vpack.c.bf16 %v335_v54, %v334_v53  ;;  %v332_v63 = vld [vmem:[%s1184_s8] sm:$0xff]  ;;  %v333_v0 = vld [vmem:[%s1184_s8 + $0x8] sm:$0xff] }
  0x1a   : > { %v460_v51 = vsel %vm440_vm0, %v366_v49, 0  ;;  %v373_v60 = vpack.c.bf16 %v351_v57, %v350_v56  ;;  %v348_v1 = vld [vmem:[%s1184_s8 + $0x80] sm:$0xff]  ;;  %v349_v2 = vld [vmem:[%s1184_s8 + $0x88] sm:$0xff]  ;;  %v364_v4 = vpack.c.bf16 %v333_v0, %v332_v63  ;;  %v325_v10 = vld [vmem:[%s1536_s4 + $0x10] sm:$0xff] }
  0x1b   : > { %v484_v52 = vsel %vm440_vm0, %v374_v50, 0  ;;  %v457_v61 = vsel %vm440_vm0, %v365_v59, 0  ;;  %v316_v3 = vld [vmem:[%s1534_s2 + $0x8] sm:$0xff]  ;;  %v372_v5 = vpack.c.bf16 %v349_v2, %v348_v1  ;;  %v1255_v8 = vld [vmem:[%s1533_s1] sm:$0xff]  ;;  %v317_v12 = vld [vmem:[%s1534_s2 + $0x10] sm:$0xff] }
  0x1c   : > { %502 = vmatpush.bf16.xpose.msra.mxu0 %v472_v15  ;;  %v481_v62 = vsel %vm440_vm0, %v373_v60, 0  ;;  %v454_v6 = vsel %vm440_vm0, %v364_v4, 0  ;;  %v324_v9 = vld [vmem:[%s1536_s4 + $0x8] sm:$0xff]  ;;  %v327_v13 = vld [vmem:[%s1537_s5] sm:$0xff]  ;;  %392 = vperm.xlu2 %1118, %v317_v12   ;;  %v318_v15 = vld [vmem:[%s1534_s2 + $0x18] sm:$0xff] }
  0x1d   : > { %531 = vmatpush.bf16.xpose.msra.mxu1 %v496_v16  ;;  %v478_v7 = vsel %vm440_vm0, %v372_v5, 0  ;;  %v1270_v11 = vld [vmem:[%s1533_s1 + $0x8] sm:$0xff]  ;;  %v330_v16 = vld [vmem:[%s1537_s5 + $0x18] sm:$0xff]  ;;  %v331_v17 = vld [vmem:[#allocation2] sm:$0x1] }
  0x1e   : > { %v328_v14 = vld [vmem:[%s1537_s5 + $0x8] sm:$0xff]  ;;  %v1294_v18 = vld [vmem:[%s1533_s1 + $0x10] sm:$0xff]  ;;  %v323_v19 = vld [vmem:[%s1536_s4] sm:$0xff] }
  0x1f   : > { %382 = vperm.xlu0 %1116, %v315_v58   ;;  %v326_v20 = vld [vmem:[%s1536_s4 + $0x18] sm:$0xff]  ;;  %v329_v22 = vld [vmem:[%s1537_s5 + $0x10] sm:$0xff] }
  0x20   : > { %387 = vperm.xlu1 %1117, %v316_v3   ;;  %v1309_v21 = vld [vmem:[%s1533_s1 + $0x18] sm:$0xff] }
  0x24   : > { %503 = vmatpush.bf16.xpose.msra.mxu0 %v469_v23  ;;  %397 = vperm.xlu2 %1118, %v318_v15  }
  0x25   : > { %532 = vmatpush.bf16.xpose.msra.mxu1 %v493_v24 }
  0x27   : > { %590 = vperm.xlu0 %1116, %v324_v9  }
  0x28   : > { %595 = vperm.xlu1 %1117, %v325_v10  }
  0x2c   : > { %504 = vmatpush.bf16.xpose.msra.mxu0 %v466_v31  ;;  %585 = vperm.xlu2 %1118, %v323_v19   ;;  %v764_v19 = vld [vmem:[%s1184_s8 + $0x1f8] sm:$0xff] }
  0x2d   : > { %533 = vmatpush.bf16.xpose.msra.mxu1 %v490_v32 }
  0x2f   : > { %668 = vperm.xlu0 %1116, %v327_v13   ;;  %v747_v13 = vld [vmem:[%s1184_s8 + $0x170] sm:$0xff] }
  0x30   : > { %673 = vperm.xlu1 %1117, %v328_v14   ;;  %v748_v14 = vld [vmem:[%s1184_s8 + $0x178] sm:$0xff] }
  0x34   : > { %505 = vmatpush.bf16.xpose.msra.mxu0 %v463_v41  ;;  %600 = vperm.xlu2 %1118, %v326_v20  }
  0x35   : > { %534 = vmatpush.bf16.xpose.msra.mxu1 %v487_v42 }
  0x37   : > { %683 = vperm.xlu0 %1116, %v330_v16  }
  0x38   : > { %714 = vperm.xlu1 %1117, %v331_v17   ;;  %v763_v17 = vld [vmem:[%s1184_s8 + $0x1f0] sm:$0xff] }
  0x3c   : > { %506 = vmatpush.bf16.xpose.msra.mxu0 %v460_v51  ;;  %678 = vperm.xlu2 %1118, %v329_v22  }
  0x3d   : > { %535 = vmatpush.bf16.xpose.msra.mxu1 %v484_v52 }
  0x44   : > { %507 = vmatpush.bf16.xpose.msra.mxu0 %v457_v61 }
  0x45   : > { %536 = vmatpush.bf16.xpose.msra.mxu1 %v481_v62 }
  0x4c   : > { %508 = vmatpush.bf16.xpose.msra.mxu0 %v454_v6 }
  0x4d   : > { %537 = vmatpush.bf16.xpose.msra.mxu1 %v478_v7 }
  0x53   : > { %1067 = vmatmul.msk.bf16.vlgmr.msra.gmra.mxu0 %vm440_vm0, %v1255_v8 }
  0x54   : > { %1071 = vmatmul.msk.bf16.vlgmr.msra.gmra.mxu1 %vm440_vm0, %v1255_v8 }
  0x63   : > { %1068 = vmatmul.msk.bf16.gmra.mxu0 %vm440_vm0, %v1270_v11 }
  0x64   : > { %1072 = vmatmul.msk.bf16.gmra.mxu1 %vm440_vm0, %v1270_v11 }
  0x73   : > { %1069 = vmatmul.msk.bf16.gmra.mxu0 %vm440_vm0, %v1294_v18 }
  0x74   : > { %1073 = vmatmul.msk.bf16.gmra.mxu1 %vm440_vm0, %v1294_v18 }
  0x76   : > { %v1322_v37 = vpop.permute.xlu2 %392 }
  0x7e   : > { %v1332_v48 = vpop.permute.xlu2 %397 }
  0x81   : > { %v1320_v36 = vpop.permute.xlu0 %412 }
  0x82   : > { %v1318_v35 = vpop.permute.xlu1 %402 }
  0x83   : > { %1070 = vmatmul.msk.bf16.gmra.mxu0 %vm440_vm0, %v1309_v21 }
  0x84   : > { %1074 = vmatmul.msk.bf16.gmra.mxu1 %vm440_vm0, %v1309_v21 }
  0x89   : > { %v1326_v41 = vpop.permute.xlu0 %417 }
  0x8a   : > { %v1324_v40 = vpop.permute.xlu1 %407 }
  0x91   : > { %v1344_v4 = vpop.permute.xlu0 %382 }
  0x92   : > { %v1339_v60 = vpop.permute.xlu1 %387 }
  0xd0   : > { %v510_v23 = vpop.f32.mrf.mxu0 }
  0xd1   : > { %v539_v24 = vpop.f32.mrf.mxu1  ;;  %v511_v15 = vadd.f32 %v510_v23, %v1344_v4 }
  0xd2   : > { %v540_v20 = vadd.f32 %v539_v24, %v1344_v4 }
  0xd4   : > { %v560_v23 = vmax.f32 %v540_v20, 0.0 }
  0xd8   : > { %v512_v25 = vpop.f32.mrf.mxu0 }
  0xd9   : > { %v541_v26 = vpop.f32.mrf.mxu1  ;;  %v513_v5 = vadd.f32 %v512_v25, %v1339_v60 }
  0xda   : > { %v542_v9 = vadd.f32 %v541_v26, %v1339_v60 }
  0xdb   : > { %v561_v25 = vmax.f32 %v513_v5, 0.0  ;;  %v739_v5 = vld [vmem:[%s1184_s8 + $0x130] sm:$0xff] }
  0xdc   : > { %v562_v26 = vmax.f32 %v542_v9, 0.0  ;;  %v756_v9 = vld [vmem:[%s1184_s8 + $0x1b8] sm:$0xff] }
  0xde   : > { %v576_v24 = vpack.c.bf16 %v562_v26, %v560_v23  ;;  %v736_v26 = vld [vmem:[%s1184_s8 + $0x118] sm:$0xff] }
  0xe0   : > { %v515_v27 = vpop.f32.mrf.mxu0 }
  0xe1   : > { %v544_v28 = vpop.f32.mrf.mxu1  ;;  %v516_v0 = vadd.f32 %v515_v27, %v1322_v37 }
  0xe2   : > { %v545_v2 = vadd.f32 %v544_v28, %v1322_v37  ;;  %v772_v28 = vpack.c.bf16 %v748_v14, %v747_v13 }
  0xe3   : > { %v563_v16 = vmax.f32 %v516_v0, 0.0 }
  0xe4   : > { %v564_v22 = vmax.f32 %v545_v2, 0.0 }
  0xe8   : > { %v517_v29 = vpop.f32.mrf.mxu0 }
  0xe9   : > { %v546_v30 = vpop.f32.mrf.mxu1  ;;  %v518_v57 = vadd.f32 %v517_v29, %v1332_v48 }
  0xea   : > { %v547_v61 = vadd.f32 %v546_v30, %v1332_v48  ;;  %v780_v30 = vpack.c.bf16 %v764_v19, %v763_v17  ;;  %v753_v17 = vld [vmem:[%s1184_s8 + $0x1a0] sm:$0xff]  ;;  %v754_v19 = vld [vmem:[%s1184_s8 + $0x1a8] sm:$0xff] }
  0xeb   : > { %v565_v6 = vmax.f32 %v518_v57, 0.0 }
  0xec   : > { %v566_v10 = vmax.f32 %v547_v61, 0.0  ;;  %v742_v61 = vld [vmem:[%s1184_s8 + $0x148] sm:$0xff] }
  0xed   : > { %v577_v27 = vpack.c.bf16 %v565_v6, %v563_v16  ;;  %v740_v6 = vld [vmem:[%s1184_s8 + $0x138] sm:$0xff]  ;;  %v738_v16 = vld [vmem:[%s1184_s8 + $0x128] sm:$0xff] }
  0xee   : > { %v578_v29 = vpack.c.bf16 %v566_v10, %v564_v22  ;;  %v768_v10 = vpack.c.bf16 %v740_v6, %v739_v5  ;;  %v775_v22 = vpack.c.bf16 %v754_v19, %v753_v17 }
  0xf0   : > { %v520_v31 = vpop.f32.mrf.mxu0  ;;  %v791_v13 = vsel %vm440_vm0, %v768_v10, 0 }
  0xf1   : > { %v549_v32 = vpop.f32.mrf.mxu1  ;;  %v521_v51 = vadd.f32 %v520_v31, %v1318_v35  ;;  %v559_v31 = vmax.f32 %v511_v15, 0.0  ;;  %v737_v15 = vld [vmem:[%s1184_s8 + $0x120] sm:$0xff] }
  0xf2   : > { %v550_v54 = vadd.f32 %v549_v32, %v1318_v35  ;;  %v767_v20 = vpack.c.bf16 %v738_v16, %v737_v15 }
  0xf3   : > { %v567_v1 = vmax.f32 %v521_v51, 0.0  ;;  %v575_v32 = vpack.c.bf16 %v561_v25, %v559_v31  ;;  %v744_v51 = vld [vmem:[%s1184_s8 + $0x158] sm:$0xff] }
  0xf4   : > { %v568_v3 = vmax.f32 %v550_v54, 0.0  ;;  %v788_v25 = vsel %vm440_vm0, %v767_v20, 0 }
  0xf8   : > { %v522_v33 = vpop.f32.mrf.mxu0 }
  0xf9   : > { %v551_v34 = vpop.f32.mrf.mxu1  ;;  %v523_v45 = vadd.f32 %v522_v33, %v1324_v40  ;;  %v803_v33 = vsel %vm440_vm0, %v772_v28, 0  ;;  %v735_v28 = vld [vmem:[%s1184_s8 + $0x110] sm:$0xff] }
  0xfa   : > { %v552_v49 = vadd.f32 %v551_v34, %v1324_v40  ;;  %v827_v34 = vsel %vm440_vm0, %v780_v30, 0  ;;  %v752_v30 = vld [vmem:[%s1184_s8 + $0x198] sm:$0xff]  ;;  %v766_v31 = vpack.c.bf16 %v736_v26, %v735_v28 }
  0xfb   : > { %v569_v58 = vmax.f32 %v523_v45, 0.0 }
  0xfc   : > { %v570_v62 = vmax.f32 %v552_v49, 0.0 }
  0xfd   : > { %v579_v7 = vpack.c.bf16 %v569_v58, %v567_v1  ;;  %v1380_v58 = vld [vmem:[%s1535_s3 + $0x8] sm:$0xff] }
  0xfe   : > { %v580_v12 = vpack.c.bf16 %v570_v62, %v568_v3  ;;  %v757_v62 = vld [vmem:[%s1184_s8 + $0x1c0] sm:$0xff] }
 0x100   : > { %v525_v38 = vpop.f32.mrf.mxu0 }
 0x101   : > { %v554_v39 = vpop.f32.mrf.mxu1  ;;  %v526_v42 = vadd.f32 %v525_v38, %v1320_v36  ;;  %v1359_v38 = vld [vmem:[%s1535_s3] sm:$0xff] }
 0x102   : > { %v555_v43 = vadd.f32 %v554_v39, %v1320_v36  ;;  %v745_v39 = vld [vmem:[%s1184_s8 + $0x160] sm:$0xff] }
 0x103   : > { %v571_v52 = vmax.f32 %v526_v42, 0.0  ;;  %v746_v42 = vld [vmem:[%s1184_s8 + $0x168] sm:$0xff] }
 0x104   : > { %v572_v55 = vmax.f32 %v555_v43, 0.0  ;;  %v761_v43 = vld [vmem:[%s1184_s8 + $0x1e0] sm:$0xff]  ;;  %v771_v45 = vpack.c.bf16 %v746_v42, %v745_v39  ;;  %v750_v42 = vld [vmem:[%s1184_s8 + $0x188] sm:$0xff] }
 0x105   : > { %v749_v39 = vld [vmem:[%s1184_s8 + $0x180] sm:$0xff] }
 0x108   : > { %v527_v44 = vpop.f32.mrf.mxu0 }
 0x109   : > { %v528_v46 = vadd.f32 %v527_v44, %v1326_v41  ;;  %v556_v47 = vpop.f32.mrf.mxu1  ;;  %v762_v44 = vld [vmem:[%s1184_s8 + $0x1e8] sm:$0xff] }
 0x10a   : > { %v557_v50 = vadd.f32 %v556_v47, %v1326_v41  ;;  %v800_v47 = vsel %vm440_vm0, %v771_v45, 0 }
 0x10b   : > { %v573_v53 = vmax.f32 %v528_v46, 0.0  ;;  %v779_v46 = vpack.c.bf16 %v762_v44, %v761_v43  ;;  %v773_v44 = vpack.c.bf16 %v750_v42, %v749_v39 }
 0x10c   : > { %v574_v56 = vmax.f32 %v557_v50, 0.0  ;;  %v743_v50 = vld [vmem:[%s1184_s8 + $0x150] sm:$0xff] }
 0x10d   : > { %v581_v59 = vpack.c.bf16 %v573_v53, %v571_v52  ;;  %v824_v49 = vsel %vm440_vm0, %v779_v46, 0  ;;  %v759_v52 = vld [vmem:[%s1184_s8 + $0x1d0] sm:$0xff]  ;;  %v760_v53 = vld [vmem:[%s1184_s8 + $0x1d8] sm:$0xff]  ;;  %v770_v54 = vpack.c.bf16 %v744_v51, %v743_v50  ;;  %v806_v46 = vsel %vm440_vm0, %v773_v44, 0  ;;  %v1434_v50 = vpop.permute.xlu0 %590 }
 0x10e   : > { %v582_v63 = vpack.c.bf16 %v574_v56, %v572_v55  ;;  %v778_v55 = vpack.c.bf16 %v760_v53, %v759_v52  ;;  %v1436_v52 = vpop.permute.xlu1 %595 }
 0x10f   : > { %624 = vmatpush.bf16.msra.mxu2 %v581_v59  ;;  %v797_v56 = vsel %vm440_vm0, %v770_v54, 0  ;;  %v741_v59 = vld [vmem:[%s1184_s8 + $0x140] sm:$0xff] }
 0x110   : > { %643 = vmatpush.bf16.msra.mxu3 %v582_v63  ;;  %v821_v57 = vsel %vm440_vm0, %v778_v55, 0  ;;  %v758_v63 = vld [vmem:[%s1184_s8 + $0x1c8] sm:$0xff]  ;;  %v769_v0 = vpack.c.bf16 %v742_v61, %v741_v59 }
 0x111   : > { %v777_v1 = vpack.c.bf16 %v758_v63, %v757_v62 }
 0x112   : > { %v794_v2 = vsel %vm440_vm0, %v769_v0, 0 }
 0x113   : > { %625 = vmatpush.bf16.msra.mxu2 %v579_v7  ;;  %v818_v3 = vsel %vm440_vm0, %v777_v1, 0  ;;  %v755_v7 = vld [vmem:[%s1184_s8 + $0x1b0] sm:$0xff] }
 0x114   : > { %644 = vmatpush.bf16.msra.mxu3 %v580_v12  ;;  %v776_v12 = vpack.c.bf16 %v756_v9, %v755_v7 }
 0x115   : > { %v1444_v59 = vpop.permute.xlu0 %668 }
 0x116   : > { %v815_v14 = vsel %vm440_vm0, %v776_v12, 0 }
 0x117   : > { %626 = vmatpush.bf16.msra.mxu2 %v577_v27  ;;  %v812_v27 = vsel %vm440_vm0, %v775_v22, 0 }
 0x118   : > { %645 = vmatpush.bf16.msra.mxu3 %v578_v29  ;;  %v751_v29 = vld [vmem:[%s1184_s8 + $0x190] sm:$0xff] }
 0x119   : > { %v774_v23 = vpack.c.bf16 %v752_v30, %v751_v29 }
 0x11b   : > { %627 = vmatpush.bf16.msra.mxu2 %v575_v32  ;;  %v785_v32 = vsel %vm440_vm0, %v766_v31, 0 }
 0x11c   : > { %646 = vmatpush.bf16.msra.mxu3 %v576_v24  ;;  %v733_v24 = vld [vmem:[%s1184_s8 + $0x100] sm:$0xff] }
 0x11e   : > { %1083 = vmatmul.msk.bf16.vlgmr.msra.gmra.mxu2 %vm613_vm1, %v1359_v38 }
 0x11f   : > { %829 = vmatpush.bf16.xpose.msrb.mxu2 %v803_v33  ;;  %1085 = vmatmul.msk.bf16.vlgmr.msra.gmra.mxu3 %vm613_vm1, %v1359_v38  ;;  %v809_v33 = vsel %vm440_vm0, %v774_v23, 0 }
 0x120   : > { %858 = vmatpush.bf16.xpose.msrb.mxu3 %v827_v34  ;;  %v734_v34 = vld [vmem:[%s1184_s8 + $0x108] sm:$0xff]  ;;  %s1050_s8 = sshll.u32 %s1043_s27, 2 }
 0x121   : > { %v765_v43 = vpack.c.bf16 %v734_v34, %v733_v24  ;;  %p298_p4 = scmp.lt.s32.totalorder %s1050_s8, 7 }
 0x123   : > { %v782_v45 = vsel %vm440_vm0, %v765_v43, 0  ;;  %s1545_s8 = smov (!%p298_p4, %s1050_s8), 7 }
 0x124   : > { %s1473_s12 = scalar_lea.vmem %s1539_s7, %s1545_s8 }
 0x127   : > { %830 = vmatpush.bf16.xpose.msrb.mxu2 %v800_v47 }
 0x128   : > { %859 = vmatpush.bf16.xpose.msrb.mxu3 %v824_v49  ;;  %v1432_v49 = vpop.permute.xlu2 %585 }
 0x12e   : > { %1084 = vmatmul.msk.bf16.gmra.mxu2 %vm613_vm1, %v1380_v58 }
 0x12f   : > { %831 = vmatpush.bf16.xpose.msrb.mxu2 %v797_v56  ;;  %1086 = vmatmul.msk.bf16.gmra.mxu3 %vm613_vm1, %v1380_v58 }
 0x130   : > { %860 = vmatpush.bf16.xpose.msrb.mxu3 %v821_v57  ;;  %v1438_v53 = vpop.permute.xlu2 %600 }
 0x137   : > { %832 = vmatpush.bf16.xpose.msrb.mxu2 %v794_v2 }
 0x138   : > { %861 = vmatpush.bf16.xpose.msrb.mxu3 %v818_v3  ;;  %v1448_v3 = vpop.permute.xlu1 %673  ;;  %v1451_v9 = vpop.permute.xlu2 %678 }
 0x13f   : > { %833 = vmatpush.bf16.xpose.msrb.mxu2 %v791_v13 }
 0x140   : > { %862 = vmatpush.bf16.xpose.msrb.mxu3 %v815_v14 }
 0x147   : > { %834 = vmatpush.bf16.xpose.msrb.mxu2 %v788_v25 }
 0x148   : > { %863 = vmatpush.bf16.xpose.msrb.mxu3 %v812_v27  ;;  %v1460_v27 = vpop.permute.xlu0 %683 }
 0x14f   : > { %835 = vmatpush.bf16.xpose.msrb.mxu2 %v785_v32 }
 0x150   : > { %864 = vmatpush.bf16.xpose.msrb.mxu3 %v809_v33 }
 0x157   : > { %836 = vmatpush.bf16.xpose.msrb.mxu2 %v782_v45 }
 0x158   : > { %865 = vmatpush.bf16.xpose.msrb.mxu3 %v806_v46 }
 0x15e   : > { %1087 = vmatmul.msk.bf16.vlgmr.msrb.gmra.mxu2 %vm440_vm0, %v1255_v8 }
 0x15f   : > { %1091 = vmatmul.msk.bf16.vlgmr.msrb.gmra.mxu3 %vm440_vm0, %v1255_v8 }
 0x16e   : > { %1088 = vmatmul.msk.bf16.gmra.mxu2 %vm440_vm0, %v1270_v11 }
 0x16f   : > { %1092 = vmatmul.msk.bf16.gmra.mxu3 %vm440_vm0, %v1270_v11 }
 0x17e   : > { %1089 = vmatmul.msk.bf16.gmra.mxu2 %vm440_vm0, %v1294_v18 }
 0x17f   : > { %1093 = vmatmul.msk.bf16.gmra.mxu3 %vm440_vm0, %v1294_v18 }
 0x18e   : > { %1090 = vmatmul.msk.bf16.gmra.mxu2 %vm440_vm0, %v1309_v21 }
 0x18f   : > { %1094 = vmatmul.msk.bf16.gmra.mxu3 %vm440_vm0, %v1309_v21 }
 0x1a1   : > { %v629_v47 = vpop.f32.mrf.mxu2 }
 0x1a2   : > { %v648_v8 = vpop.f32.mrf.mxu3  ;;  %v630_v56 = vadd.f32 %v629_v47, %v1432_v49  ;;  %v715_v47 = vpop.permute.xlu1 %714 }
 0x1a3   : > { %v649_v61 = vadd.f32 %v648_v8, %v1432_v49 }
 0x1a4   : > { %v658_v1 = vmax.f32 %v630_v56, 0.0 }
 0x1a5   : > { %v659_v5 = vmax.f32 %v649_v61, 0.0 }
 0x1a6   : > { %v686_v13 = vmul.f32 %v1444_v59, %v658_v1 }
 0x1a7   : > { %v687_v17 = vmul.f32 %v1444_v59, %v659_v5 }
 0x1a9   : > { %v631_v51 = vpop.f32.mrf.mxu2 }
 0x1aa   : > { %v650_v11 = vpop.f32.mrf.mxu3  ;;  %v632_v18 = vadd.f32 %v631_v51, %v1434_v50 }
 0x1ab   : > { %v651_v54 = vadd.f32 %v650_v11, %v1434_v50 }
 0x1ac   : > { %v660_v63 = vmax.f32 %v632_v18, 0.0  ;;  %v1466_v18 = vperm.slane %v715_v47, 0 }
 0x1ad   : > { %v661_v0 = vmax.f32 %v651_v54, 0.0 }
 0x1ae   : > { %v688_v7 = vmul.f32 %v1448_v3, %v660_v63 }
 0x1af   : > { %v689_v10 = vmul.f32 %v1448_v3, %v661_v0 }
 0x1b0   : > { %v694_v22 = vadd.f32 %v688_v7, %v686_v13 }
 0x1b1   : > { %v634_v55 = vpop.f32.mrf.mxu2  ;;  %v703_v28 = vadd.f32 %v689_v10, %v687_v17 }
 0x1b2   : > { %v635_v21 = vadd.f32 %v634_v55, %v1436_v52  ;;  %v653_v57 = vpop.f32.mrf.mxu3 }
 0x1b3   : > { %v654_v62 = vadd.f32 %v653_v57, %v1436_v52 }
 0x1b4   : > { %v662_v2 = vmax.f32 %v635_v21, 0.0  ;;  %v728_v21 = vlaneseq }
 0x1b5   : > { %v663_v6 = vmax.f32 %v654_v62, 0.0 }
 0x1b6   : > { %v690_v14 = vmul.f32 %v1451_v9, %v662_v2  ;;  %vm1475_vm3 = vcmp.lt.s32.totalorder %v728_v21, 256 }
 0x1b7   : > { %v691_v19 = vmul.f32 %v1451_v9, %v663_v6 }
 0x1b8   : > { %v695_v29 = vadd.f32 %v694_v22, %v690_v14 }
 0x1b9   : > { %v636_v12 = vpop.f32.mrf.mxu2  ;;  %v704_v31 = vadd.f32 %v703_v28, %v691_v19 }
 0x1ba   : > { %v637_v15 = vadd.f32 %v636_v12, %v1438_v53  ;;  %v655_v16 = vpop.f32.mrf.mxu3 }
 0x1bb   : > { %v656_v20 = vadd.f32 %v655_v16, %v1438_v53 }
 0x1bc   : > { %v664_v25 = vmax.f32 %v637_v15, 0.0 }
 0x1bd   : > { %v665_v26 = vmax.f32 %v656_v20, 0.0 }
 0x1be   : > { %v692_v30 = vmul.f32 %v1460_v27, %v664_v25 }
 0x1bf   : > { %v693_v23 = vmul.f32 %v1460_v27, %v665_v26 }
 0x1c0   : > { %v696_v32 = vadd.f32 %v695_v29, %v692_v30 }
 0x1c1   : > { %v705_v33 = vadd.f32 %v704_v31, %v693_v23 }
 0x1c2   : > { %v697_v24 = vrot.slane %v696_v32, 4 }
 0x1c3   : > { %v706_v34 = vrot.slane %v705_v33, 4 }
 0x1c4   : > { %v698_v39 = vadd.f32 %v697_v24, %v696_v32 }
 0x1c5   : > { %v707_v42 = vadd.f32 %v706_v34, %v705_v33 }
 0x1c6   : > { %v699_v43 = vrot.slane %v698_v39, 2 }
 0x1c7   : > { %v708_v44 = vrot.slane %v707_v42, 2 }
 0x1c8   : > { %v700_v45 = vadd.f32 %v699_v43, %v698_v39 }
 0x1c9   : > { %v709_v46 = vadd.f32 %v708_v44, %v707_v42 }
 0x1ca   : > { %v701_v8 = vrot.slane %v700_v45, 1 }
 0x1cb   : > { %v710_v51 = vrot.slane %v709_v46, 1 }
 0x1cc   : > { %v702_v11 = vadd.f32 %v701_v8, %v700_v45 }
 0x1cd   : > { %v711_v54 = vadd.f32 %v710_v51, %v709_v46 }
 0x1ce   : > { %v718_v55 = vadd.f32 %v1466_v18, %v702_v11 }
 0x1cf   : > { %v719_v56 = vadd.f32 %v1466_v18, %v711_v54 }
 0x1d0   : > { %v720_v61 = vmax.f32 %v718_v55, 0.0 }
 0x1d1   : > { %v721_v57 = vmax.f32 %v719_v56, 0.0 }
 0x1d3   : > { %v724_v62 = vrot.slane %v721_v57, 7 }
 0x1d5   : > { %v726_v0 = vsel %vm725_vm2, %v720_v61, %v724_v62 }
 0x1d6   : > { %732 = vst.msk [vmem:[%s1473_s12] sm:$0x3] %vm1475_vm3, %v726_v0 }
 0x1e1   : > { %v838_v1 = vpop.f32.mrf.mxu2 }
 0x1e2   : > { %v867_v2 = vpop.f32.mrf.mxu3 }
 0x1e3   : > { %v868_v61 = vadd.f32 %v867_v2, %v1344_v4 }
 0x1e9   : > { %v840_v5 = vpop.f32.mrf.mxu2 }
 0x1ea   : > { %v869_v6 = vpop.f32.mrf.mxu3 }
 0x1eb   : > { %v870_v55 = vadd.f32 %v869_v6, %v1339_v60 }
 0x1f1   : > { %v843_v7 = vpop.f32.mrf.mxu2 }
 0x1f2   : > { %v872_v10 = vpop.f32.mrf.mxu3 }
 0x1f9   : > { %v845_v12 = vpop.f32.mrf.mxu2 }
 0x1fa   : > { %v874_v13 = vpop.f32.mrf.mxu3 }
 0x1fb   : > { %v875_v45 = vadd.f32 %v874_v13, %v1332_v48 }
 0x1fd   : > { %v894_v56 = vmax.f32 %v875_v45, 0.0 }
 0x201   : > { %v848_v14 = vpop.f32.mrf.mxu2 }
 0x202   : > { %v877_v15 = vpop.f32.mrf.mxu3  ;;  %v849_v32 = vadd.f32 %v848_v14, %v1318_v35 }
 0x203   : > { %v878_v34 = vadd.f32 %v877_v15, %v1318_v35  ;;  %v841_v35 = vadd.f32 %v840_v5, %v1339_v60  ;;  %v888_v5 = vmax.f32 %v868_v61, 0.0 }
 0x204   : > { %v895_v8 = vmax.f32 %v849_v32, 0.0 }
 0x205   : > { %v896_v51 = vmax.f32 %v878_v34, 0.0  ;;  %v889_v0 = vmax.f32 %v841_v35, 0.0 }
 0x209   : > { %v850_v16 = vpop.f32.mrf.mxu2 }
 0x20a   : > { %v879_v17 = vpop.f32.mrf.mxu3  ;;  %v851_v26 = vadd.f32 %v850_v16, %v1324_v40 }
 0x20b   : > { %v880_v31 = vadd.f32 %v879_v17, %v1324_v40  ;;  %v844_v40 = vadd.f32 %v843_v7, %v1322_v37  ;;  %v890_v7 = vmax.f32 %v870_v55, 0.0 }
 0x20c   : > { %v897_v43 = vmax.f32 %v851_v26, 0.0 }
 0x20d   : > { %v898_v46 = vmax.f32 %v880_v31, 0.0  ;;  %v891_v57 = vmax.f32 %v844_v40, 0.0  ;;  %v904_v60 = vpack.c.bf16 %v890_v7, %v888_v5 }
 0x20e   : > { %v907_v54 = vpack.c.bf16 %v897_v43, %v895_v8 }
 0x20f   : > { %v908_v21 = vpack.c.bf16 %v898_v46, %v896_v51 }
 0x211   : > { %v853_v19 = vpop.f32.mrf.mxu2 }
 0x212   : > { %v882_v20 = vpop.f32.mrf.mxu3  ;;  %v854_v22 = vadd.f32 %v853_v19, %v1320_v36 }
 0x213   : > { %v883_v25 = vadd.f32 %v882_v20, %v1320_v36  ;;  %v846_v36 = vadd.f32 %v845_v12, %v1332_v48  ;;  %v839_v48 = vadd.f32 %v838_v1, %v1344_v4 }
 0x214   : > { %v899_v33 = vmax.f32 %v854_v22, 0.0 }
 0x215   : > { %v900_v39 = vmax.f32 %v883_v25, 0.0  ;;  %v893_v11 = vmax.f32 %v846_v36, 0.0  ;;  %v887_v12 = vmax.f32 %v839_v48, 0.0 }
 0x217   : > { %v903_v13 = vpack.c.bf16 %v889_v0, %v887_v12 }
 0x219   : > { %v855_v28 = vpop.f32.mrf.mxu2 }
 0x21a   : > { %v856_v29 = vadd.f32 %v855_v28, %v1326_v41  ;;  %v884_v30 = vpop.f32.mrf.mxu3 }
 0x21b   : > { %v885_v23 = vadd.f32 %v884_v30, %v1326_v41  ;;  %v873_v41 = vadd.f32 %v872_v10, %v1322_v37  ;;  %v905_v37 = vpack.c.bf16 %v893_v11, %v891_v57 }
 0x21c   : > { %v901_v24 = vmax.f32 %v856_v29, 0.0 }
 0x21d   : > { %v902_v42 = vmax.f32 %v885_v23, 0.0  ;;  %v892_v62 = vmax.f32 %v873_v41, 0.0 }
 0x21e   : > { %v909_v44 = vpack.c.bf16 %v901_v24, %v899_v33 }
 0x21f   : > { %v910_v47 = vpack.c.bf16 %v902_v42, %v900_v39  ;;  %v906_v10 = vpack.c.bf16 %v894_v56, %v892_v62 }
 0x220   : > { %915 = vmatpush.bf16.msrb.mxu0 %v909_v44 }
 0x221   : > { %934 = vmatpush.bf16.msrb.mxu1 %v910_v47 }
 0x224   : > { %916 = vmatpush.bf16.msrb.mxu0 %v907_v54 }
 0x225   : > { %935 = vmatpush.bf16.msrb.mxu1 %v908_v21 }
 0x228   : > { %917 = vmatpush.bf16.msrb.mxu0 %v905_v37 }
 0x229   : > { %936 = vmatpush.bf16.msrb.mxu1 %v906_v10 }
 0x22c   : > { %918 = vmatpush.bf16.msrb.mxu0 %v903_v13 }
 0x22d   : > { %937 = vmatpush.bf16.msrb.mxu1 %v904_v60 }
 0x22f   : > { %1095 = vmatmul.msk.bf16.vlgmr.msrb.gmra.mxu0 %vm613_vm1, %v1359_v38 }
 0x230   : > { %1097 = vmatmul.msk.bf16.vlgmr.msrb.gmra.mxu1 %vm613_vm1, %v1359_v38 }
 0x23f   : > { %1096 = vmatmul.msk.bf16.gmra.mxu0 %vm613_vm1, %v1380_v58 }
 0x240   : > { %1098 = vmatmul.msk.bf16.gmra.mxu1 %vm613_vm1, %v1380_v58 }
 0x2ac   : > { %v920_v4 = vpop.f32.mrf.mxu0 }
 0x2ad   : > { %v939_v1 = vpop.f32.mrf.mxu1  ;;  %v921_v17 = vadd.f32 %v920_v4, %v1432_v49 }
 0x2ae   : > { %v940_v20 = vadd.f32 %v939_v1, %v1432_v49 }
 0x2af   : > { %v949_v28 = vmax.f32 %v921_v17, 0.0 }
 0x2b0   : > { %v950_v29 = vmax.f32 %v940_v20, 0.0 }
 0x2b1   : > { %v957_v32 = vmul.f32 %v949_v28, %v1444_v59 }
 0x2b4   : > { %v922_v2 = vpop.f32.mrf.mxu0 }
 0x2b5   : > { %v941_v6 = vpop.f32.mrf.mxu1  ;;  %v923_v14 = vadd.f32 %v922_v2, %v1434_v50 }
 0x2b6   : > { %v942_v15 = vadd.f32 %v941_v6, %v1434_v50 }
 0x2b7   : > { %v951_v25 = vmax.f32 %v923_v14, 0.0 }
 0x2b8   : > { %v952_v58 = vmax.f32 %v942_v15, 0.0 }
 0x2b9   : > { %v959_v31 = vmul.f32 %v951_v25, %v1448_v3 }
 0x2ba   : > { %v960_v50 = vmul.f32 %v952_v58, %v1448_v3 }
 0x2bb   : > { %v965_v42 = vadd.f32 %v959_v31, %v957_v32 }
 0x2bc   : > { %v925_v16 = vpop.f32.mrf.mxu0 }
 0x2bd   : > { %v926_v19 = vadd.f32 %v925_v16, %v1436_v52  ;;  %v944_v38 = vpop.f32.mrf.mxu1 }
 0x2be   : > { %v945_v22 = vadd.f32 %v944_v38, %v1436_v52  ;;  %v958_v52 = vmul.f32 %v950_v29, %v1444_v59 }
 0x2bf   : > { %v953_v26 = vmax.f32 %v926_v19, 0.0 }
 0x2c0   : > { %v954_v30 = vmax.f32 %v945_v22, 0.0  ;;  %v974_v43 = vadd.f32 %v960_v50, %v958_v52 }
 0x2c1   : > { %v961_v33 = vmul.f32 %v953_v26, %v1451_v9 }
 0x2c2   : > { %v962_v34 = vmul.f32 %v954_v30, %v1451_v9 }
 0x2c3   : > { %v966_v45 = vadd.f32 %v965_v42, %v961_v33 }
 0x2c4   : > { %v927_v23 = vpop.f32.mrf.mxu0  ;;  %v975_v46 = vadd.f32 %v974_v43, %v962_v34 }
 0x2c5   : > { %v928_v24 = vadd.f32 %v927_v23, %v1438_v53  ;;  %v946_v49 = vpop.f32.mrf.mxu1 }
 0x2c6   : > { %v947_v39 = vadd.f32 %v946_v49, %v1438_v53 }
 0x2c7   : > { %v955_v36 = vmax.f32 %v928_v24, 0.0 }
 0x2c8   : > { %v956_v44 = vmax.f32 %v947_v39, 0.0 }
 0x2c9   : > { %v963_v3 = vmul.f32 %v955_v36, %v1460_v27 }
 0x2ca   : > { %v964_v47 = vmul.f32 %v956_v44, %v1460_v27 }
 0x2cb   : > { %v967_v40 = vadd.f32 %v966_v45, %v963_v3 }
 0x2cc   : > { %v976_v8 = vadd.f32 %v975_v46, %v964_v47 }
 0x2cd   : > { %v968_v41 = vrot.slane %v967_v40, 4 }
 0x2ce   : > { %v977_v51 = vrot.slane %v976_v8, 4 }
 0x2cf   : > { %v969_v35 = vadd.f32 %v968_v41, %v967_v40 }
 0x2d0   : > { %v978_v59 = vadd.f32 %v977_v51, %v976_v8 }
 0x2d1   : > { %v970_v9 = vrot.slane %v969_v35, 2 }
 0x2d2   : > { %v979_v11 = vrot.slane %v978_v59, 2 }
 0x2d3   : > { %v971_v53 = vadd.f32 %v970_v9, %v969_v35 }
 0x2d4   : > { %v980_v54 = vadd.f32 %v979_v11, %v978_v59 }
 0x2d5   : > { %v972_v55 = vrot.slane %v971_v53, 1 }
 0x2d6   : > { %v981_v56 = vrot.slane %v980_v54, 1 }
 0x2d7   : > { %v973_v21 = vadd.f32 %v972_v55, %v971_v53 }
 0x2d8   : > { %v982_v48 = vadd.f32 %v981_v56, %v980_v54 }
 0x2d9   : > { %v983_v57 = vadd.f32 %v973_v21, %v1466_v18 }
 0x2da   : > { %v984_v61 = vadd.f32 %v982_v48, %v1466_v18 }
 0x2db   : > { %v985_v62 = vmax.f32 %v983_v57, 0.0 }
 0x2dc   : > { %v986_v27 = vmax.f32 %v984_v61, 0.0 }
 0x2de   : > { %v989_v0 = vrot.slane %v986_v27, 7 }
 0x2e0   : > { %v990_v37 = vsel %vm725_vm2, %v985_v62, %v989_v0 }
 0x2e1   : > { %992 = vst.msk [vmem:[%s1473_s12 + $0x2] sm:$0x3] %vm1475_vm3, %v990_v37 }
 0x2e2 PF: > { %s19_s26 = sadd.s32 1, %s1125_s26  }
 0x2e3   : > { %p16_p5 = scmp.ge.s32.totalorder %s19_s26, 4  }
 0x2e5   :  { %18 = sbr.rel (!%p16_p5) target bundleno = 3 (0x3), region = 78 }

</bundles_post_ra>
